<compile_context>
chip_gen: v5e
topology: v5e:2x2
jax: 0.10.0
libtpu: 0.0.40
codegen_flags: <defaults>
</compile_context>

<pallas_src>
import math

import jax
import jax.numpy as jnp
from jax.experimental import pallas as pl
from jax.experimental.pallas import tpu as pltpu

_DMA_WINDOW = 16   # in-flight row-gather DMAs per table (HBM-gather path)
_UNROLL = 8        # manual unroll factor of the per-row gather loops
_MAX_TILE = 512    # batch rows per grid step (multiple of 8)


def _weighted_reduce_to_row(u_buf, i_buf, w_ref, o_ref):
    """Shared epilogue: (tb, F) gather buffers -> lane-dense (1, 1, tb) output."""
    # GMF interaction on the VPU, accumulation in f32 (tables may be bf16).
    prod = u_buf[...].astype(jnp.float32) * i_buf[...].astype(jnp.float32)   # (tb, F)
    w8 = jnp.broadcast_to(w_ref[...].astype(jnp.float32), (8, w_ref.shape[1]))
    # (8,F) x (tb,F)^T -> (8,tb): folds the Linear(F,1,bias=False) weighting and
    # the sublane->lane orientation change into one (otherwise idle) MXU op so
    # the store is a dense full-lane row instead of a masked lane-1 column.
    rows = jax.lax.dot_general(w8, prod, (((1,), (1,)), ((), ())),
                               preferred_element_type=jnp.float32)           # (8, tb)
    o_ref[...] = rows[0:1, :].reshape(o_ref.shape)


def _gmf_resident_kernel(uid_ref, iid_ref,        # SMEM prefetch: i32 [nb, tb]
                         w_ref,                   # VMEM: [1, F]
                         u_tab_ref, i_tab_ref,    # VMEM: whole tables (copied once)
                         o_ref,                   # VMEM: f32 [1, 1, tb]
                         u_buf, i_buf):           # VMEM scratch: [tb, F]
    b = pl.program_id(0)
    tb = u_buf.shape[0]

    def gather8(t, carry):
        base = pl.multiple_of(t * _UNROLL, _UNROLL)
        for j in range(_UNROLL):                  # manual unroll: 8 rows / trip
            s = base + j
            uid = uid_ref[b, s]
            iid = iid_ref[b, s]
            # In-VMEM dynamic row loads: no DMA descriptors at all.
            u_buf[pl.ds(s, 1), :] = u_tab_ref[pl.ds(uid, 1), :]
            i_buf[pl.ds(s, 1), :] = i_tab_ref[pl.ds(iid, 1), :]
        return carry

    jax.lax.fori_loop(0, tb // _UNROLL, gather8, 0)
    _weighted_reduce_to_row(u_buf, i_buf, w_ref, o_ref)


def _gmf_hbm_kernel(uid_ref, iid_ref,             # SMEM prefetch: i32 [nb, tb]
                    w_ref,                        # VMEM: [1, F]
                    u_tab_ref, i_tab_ref,         # HBM refs (pl.ANY)
                    o_ref,                        # VMEM: f32 [1, 1, tb]
                    u_buf, i_buf,                 # VMEM scratch: [tb, F]
                    sems):                        # DMA sems: (2, _DMA_WINDOW)
    b = pl.program_id(0)
    tb = u_buf.shape[0]

    def start_row(s, uid, iid):
        slot = s % _DMA_WINDOW
        pltpu.make_async_copy(u_tab_ref.at[pl.ds(uid, 1), :],
                              u_buf.at[pl.ds(s, 1), :], sems.at[0, slot]).start()
        pltpu.make_async_copy(i_tab_ref.at[pl.ds(iid, 1), :],
                              i_buf.at[pl.ds(s, 1), :], sems.at[1, slot]).start()

    def wait_row(s):
        # Reconstructed descriptor: the wait only needs dst shape + semaphore;
        # keep src/dst slice shapes identical to start_row's.
        slot = s % _DMA_WINDOW
        pltpu.make_async_copy(u_tab_ref.at[pl.ds(0, 1), :],
                              u_buf.at[pl.ds(s, 1), :], sems.at[0, slot]).wait()
        pltpu.make_async_copy(i_tab_ref.at[pl.ds(0, 1), :],
                              i_buf.at[pl.ds(s, 1), :], sems.at[1, slot]).wait()

    # Prime the in-flight window (static unroll).
    for s in range(min(_DMA_WINDOW, tb)):
        start_row(s, uid_ref[b, s], iid_ref[b, s])

    def body8(t, carry):
        base = pl.multiple_of(t * _UNROLL, _UNROLL)
        # Hoist the next-row id reads above the waits: a DMA .wait() breaks
        # SMEM sst->sld forwarding.  Indices are clamped so reads stay valid.
        nxt_ids = []
        for j in range(_UNROLL):
            nxt = jnp.minimum(base + j + _DMA_WINDOW, tb - 1)
            nxt_ids.append((uid_ref[b, nxt], iid_ref[b, nxt]))
        for j in range(_UNROLL):
            s = base + j
            wait_row(s)
            nxt_s = s + _DMA_WINDOW

            @pl.when(nxt_s < tb)
            def _(nxt_s=nxt_s, uid_n=nxt_ids[j][0], iid_n=nxt_ids[j][1]):
                start_row(nxt_s, uid_n, iid_n)
        return carry

    jax.lax.fori_loop(0, tb // _UNROLL, body8, 0)
    _weighted_reduce_to_row(u_buf, i_buf, w_ref, o_ref)


def _padded_vmem_bytes(table):
    """Physical VMEM footprint of a table (sublanes pad to 8, lanes to 128)."""
    rows, f = map(int, table.shape)
    rows_p = ((rows + 7) // 8) * 8
    f_p = ((f + 127) // 128) * 128
    return rows_p * f_p * jnp.dtype(table.dtype).itemsize


def gmf_forward(user_ids, item_ids, user_table, item_table, predict_w,
                *, force_hbm_gather=False,
                resident_budget_bytes=8 * 1024 * 1024):
    """GMF forward.

    user_ids, item_ids : int [B]
    user_table         : [num_user, F]   (f32 or bf16)
    item_table         : [num_item, F]   (f32 or bf16)
    predict_w          : f32 [1, F]      (PyTorch Linear(F,1,bias=False).weight)
    returns            : f32 [B]
    """
    B = int(user_ids.shape[0])
    num_user, F = map(int, user_table.shape)
    num_item = int(item_table.shape[0])

    b_pad8 = ((B + 7) // 8) * 8
    tb = min(_MAX_TILE, b_pad8)                 # multiple of 8, keeps >=2 blocks
    num_blocks = int(pl.cdiv(B, tb))            # for realistic B (v7x megacore)
    b_pad = num_blocks * tb

    # Pad ids to whole tiles (row 0 is always valid; padded rows are discarded)
    # and reshape to (num_blocks, tb) so SMEM padding stays ~= raw size.
    uid = jnp.zeros((b_pad,), jnp.int32).at[:B].set(user_ids.astype(jnp.int32))
    iid = jnp.zeros((b_pad,), jnp.int32).at[:B].set(item_ids.astype(jnp.int32))
    uid = uid.reshape(num_blocks, tb)
    iid = iid.reshape(num_blocks, tb)

    w_spec = pl.BlockSpec((1, F), lambda blk, *_: (0, 0))
    out_spec = pl.BlockSpec((1, 1, tb), lambda blk, *_: (blk, 0, 0))  # lane-dense
    out_shape = jax.ShapeDtypeStruct((num_blocks, 1, tb), jnp.float32)

    # Dispatch: table-resident fast path if both tables (double-buffered,
    # lane-padded) comfortably fit VMEM on every generation (incl. v5e default).
    tables_vmem = 2 * (_padded_vmem_bytes(user_table) + _padded_vmem_bytes(item_table))
    resident = (not force_hbm_gather) and tables_vmem <= resident_budget_bytes

    if resident:
        kernel = _gmf_resident_kernel
        in_specs = [
            w_spec,
            pl.BlockSpec((num_user, F), lambda blk, *_: (0, 0)),  # whole table,
            pl.BlockSpec((num_item, F), lambda blk, *_: (0, 0)),  # copied once
        ]
        scratch = [pltpu.VMEM((tb, F), user_table.dtype),
                   pltpu.VMEM((tb, F), item_table.dtype)]
    else:
        kernel = _gmf_hbm_kernel
        in_specs = [
            w_spec,
            pl.BlockSpec(memory_space=pl.ANY),    # tables stay in HBM: row DMAs
            pl.BlockSpec(memory_space=pl.ANY),
        ]
        scratch = [pltpu.VMEM((tb, F), user_table.dtype),
                   pltpu.VMEM((tb, F), item_table.dtype),
                   pltpu.SemaphoreType.DMA((2, _DMA_WINDOW))]

    out = pl.pallas_call(
        kernel,
        out_shape=out_shape,
        grid_spec=pltpu.PrefetchScalarGridSpec(
            num_scalar_prefetch=2,
            grid=(num_blocks,),
            in_specs=in_specs,
            out_specs=out_spec,
            scratch_shapes=scratch,
        ),
        compiler_params=pltpu.CompilerParams(
            dimension_semantics=("parallel",),    # v7x: 2 TCs split batch tiles
            vmem_limit_bytes=32 * 1024 * 1024,
        ),
    )(uid, iid, predict_w, user_table, item_table)

    return out.reshape(-1)[:B]


def init_gmf_params(key, num_user, num_item, num_factor):
    """Deterministic init matching the PyTorch module's _init_weight_."""
    k_u, k_i, k_w = jax.random.split(key, 3)
    # nn.init.normal_(std=0.01)
    user_table = 0.01 * jax.random.normal(k_u, (num_user, num_factor), jnp.float32)
    item_table = 0.01 * jax.random.normal(k_i, (num_item, num_factor), jnp.float32)
    # nn.init.kaiming_uniform_(weight, a=1): gain = sqrt(2/(1+a^2)) = 1,
    # bound = sqrt(3 / fan_in), fan_in = num_factor, weight shape [1, F].
    bound = math.sqrt(3.0 / num_factor)
    predict_w = jax.random.uniform(
        k_w, (1, num_factor), jnp.float32, minval=-bound, maxval=bound
    )
    return user_table, item_table, predict_w


if __name__ == "__main__":
    num_user, num_item, num_factor = 10, 20, 32
    batch = 8

    key = jax.random.PRNGKey(0)
    k_params, k_uid, k_iid = jax.random.split(key, 3)

    user_table, item_table, predict_w = init_gmf_params(
        k_params, num_user, num_item, num_factor
    )
    user_ids = jax.random.randint(k_uid, (batch,), 0, num_user, dtype=jnp.int32)
    item_ids = jax.random.randint(k_iid, (batch,), 0, num_item, dtype=jnp.int32)

    # Pure-JAX reference of the same math (gather -> elementwise -> weighted sum).
    ref = jnp.sum(
        jnp.take(user_table, user_ids, 0)
        * jnp.take(item_table, item_ids, 0)
        * predict_w,
        axis=-1,
    )

    # Fast path (tables resident in VMEM -- chosen automatically here).
    out_fast = gmf_forward(user_ids, item_ids, user_table, item_table, predict_w)
    # Fallback path (manual per-row HBM gather DMAs), exercised explicitly.
    out_slow = gmf_forward(user_ids, item_ids, user_table, item_table, predict_w,
                           force_hbm_gather=True)
    jax.block_until_ready((out_fast, out_slow))

    assert out_fast.shape == (batch,)
    assert out_slow.shape == (batch,)
    assert jnp.allclose(out_fast, ref, atol=1e-5, rtol=1e-5), "resident path mismatch"
    assert jnp.allclose(out_slow, ref, atol=1e-5, rtol=1e-5), "hbm-gather path mismatch"

    print("KERNEL_OK")
</pallas_src>

<mosaic_0001>
module attributes {stable_mosaic.version = 11 : i64} {
  func.func @_gmf_resident_kernel(%arg0: i32, %arg1: memref<1x8xi32, #tpu.memory_space<smem>>, %arg2: memref<1x8xi32, #tpu.memory_space<smem>>, %arg3: memref<1x32xf32, #tpu.memory_space<vmem>>, %arg4: memref<10x32xf32, #tpu.memory_space<vmem>>, %arg5: memref<20x32xf32, #tpu.memory_space<vmem>>, %arg6: memref<1x1x8xf32, #tpu.memory_space<vmem>>, %arg7: memref<8x32xf32, #tpu.memory_space<vmem>>, %arg8: memref<8x32xf32, #tpu.memory_space<vmem>>) attributes {dimension_semantics = [#tpu.dimension_semantics<parallel>], iteration_bounds = array<i64: 1>, scalar_prefetch = 2 : i64, scratch_operands = 2 : i64, tpu.core_type = #tpu.core_type<tc>, window_params = [{pipeline_mode = #tpu.pipeline_mode<synchronous>, transform_indices = @transform_0, window_bounds = array<i64: 1, 32>}, {pipeline_mode = #tpu.pipeline_mode<synchronous>, transform_indices = @transform_1, window_bounds = array<i64: 10, 32>}, {pipeline_mode = #tpu.pipeline_mode<synchronous>, transform_indices = @transform_2, window_bounds = array<i64: 20, 32>}, {transform_indices = @transform_3, window_bounds = array<i64: 1, 1, 8>}]} {
    %c0_i32 = arith.constant 0 : i32
    %c8_i32 = arith.constant 8 : i32
    %0 = arith.muli %c0_i32, %c8_i32 : i32
    %1 = tpu.assume_multiple %0, 8 : i32
    %c0_i32_0 = arith.constant 0 : i32
    %2 = arith.addi %1, %c0_i32_0 : i32
    %3 = arith.index_cast %arg0 : i32 to index
    %4 = arith.index_cast %2 : i32 to index
    %5 = memref.load %arg1[%3, %4] : memref<1x8xi32, #tpu.memory_space<smem>>
    %6 = arith.index_cast %arg0 : i32 to index
    %7 = arith.index_cast %2 : i32 to index
    %8 = memref.load %arg2[%6, %7] : memref<1x8xi32, #tpu.memory_space<smem>>
    %9 = arith.index_cast %5 : i32 to index
    %c0 = arith.constant 0 : index
    %10 = vector.load %arg4[%9, %c0] : memref<10x32xf32, #tpu.memory_space<vmem>>, vector<1x32xf32>
    %11 = arith.index_cast %2 : i32 to index
    %c0_1 = arith.constant 0 : index
    %12 = vector.load %arg7[%11, %c0_1] : memref<8x32xf32, #tpu.memory_space<vmem>>, vector<1x32xf32>
    tpu.vector_store %arg7[%11, %c0_1], %10 {strides = array<i32>} : memref<8x32xf32, #tpu.memory_space<vmem>>, vector<1x32xf32>,
    %13 = arith.index_cast %8 : i32 to index
    %c0_2 = arith.constant 0 : index
    %14 = vector.load %arg5[%13, %c0_2] : memref<20x32xf32, #tpu.memory_space<vmem>>, vector<1x32xf32>
    %15 = arith.index_cast %2 : i32 to index
    %c0_3 = arith.constant 0 : index
    %16 = vector.load %arg8[%15, %c0_3] : memref<8x32xf32, #tpu.memory_space<vmem>>, vector<1x32xf32>
    tpu.vector_store %arg8[%15, %c0_3], %14 {strides = array<i32>} : memref<8x32xf32, #tpu.memory_space<vmem>>, vector<1x32xf32>,
    %c1_i32 = arith.constant 1 : i32
    %17 = arith.addi %1, %c1_i32 : i32
    %18 = arith.index_cast %arg0 : i32 to index
    %19 = arith.index_cast %17 : i32 to index
    %20 = memref.load %arg1[%18, %19] : memref<1x8xi32, #tpu.memory_space<smem>>
    %21 = arith.index_cast %arg0 : i32 to index
    %22 = arith.index_cast %17 : i32 to index
    %23 = memref.load %arg2[%21, %22] : memref<1x8xi32, #tpu.memory_space<smem>>
    %24 = arith.index_cast %20 : i32 to index
    %c0_4 = arith.constant 0 : index
    %25 = vector.load %arg4[%24, %c0_4] : memref<10x32xf32, #tpu.memory_space<vmem>>, vector<1x32xf32>
    %26 = arith.index_cast %17 : i32 to index
    %c0_5 = arith.constant 0 : index
    %27 = vector.load %arg7[%26, %c0_5] : memref<8x32xf32, #tpu.memory_space<vmem>>, vector<1x32xf32>
    tpu.vector_store %arg7[%26, %c0_5], %25 {strides = array<i32>} : memref<8x32xf32, #tpu.memory_space<vmem>>, vector<1x32xf32>,
    %28 = arith.index_cast %23 : i32 to index
    %c0_6 = arith.constant 0 : index
    %29 = vector.load %arg5[%28, %c0_6] : memref<20x32xf32, #tpu.memory_space<vmem>>, vector<1x32xf32>
    %30 = arith.index_cast %17 : i32 to index
    %c0_7 = arith.constant 0 : index
    %31 = vector.load %arg8[%30, %c0_7] : memref<8x32xf32, #tpu.memory_space<vmem>>, vector<1x32xf32>
    tpu.vector_store %arg8[%30, %c0_7], %29 {strides = array<i32>} : memref<8x32xf32, #tpu.memory_space<vmem>>, vector<1x32xf32>,
    %c2_i32 = arith.constant 2 : i32
    %32 = arith.addi %1, %c2_i32 : i32
    %33 = arith.index_cast %arg0 : i32 to index
    %34 = arith.index_cast %32 : i32 to index
    %35 = memref.load %arg1[%33, %34] : memref<1x8xi32, #tpu.memory_space<smem>>
    %36 = arith.index_cast %arg0 : i32 to index
    %37 = arith.index_cast %32 : i32 to index
    %38 = memref.load %arg2[%36, %37] : memref<1x8xi32, #tpu.memory_space<smem>>
    %39 = arith.index_cast %35 : i32 to index
    %c0_8 = arith.constant 0 : index
    %40 = vector.load %arg4[%39, %c0_8] : memref<10x32xf32, #tpu.memory_space<vmem>>, vector<1x32xf32>
    %41 = arith.index_cast %32 : i32 to index
    %c0_9 = arith.constant 0 : index
    %42 = vector.load %arg7[%41, %c0_9] : memref<8x32xf32, #tpu.memory_space<vmem>>, vector<1x32xf32>
    tpu.vector_store %arg7[%41, %c0_9], %40 {strides = array<i32>} : memref<8x32xf32, #tpu.memory_space<vmem>>, vector<1x32xf32>,
    %43 = arith.index_cast %38 : i32 to index
    %c0_10 = arith.constant 0 : index
    %44 = vector.load %arg5[%43, %c0_10] : memref<20x32xf32, #tpu.memory_space<vmem>>, vector<1x32xf32>
    %45 = arith.index_cast %32 : i32 to index
    %c0_11 = arith.constant 0 : index
    %46 = vector.load %arg8[%45, %c0_11] : memref<8x32xf32, #tpu.memory_space<vmem>>, vector<1x32xf32>
    tpu.vector_store %arg8[%45, %c0_11], %44 {strides = array<i32>} : memref<8x32xf32, #tpu.memory_space<vmem>>, vector<1x32xf32>,
    %c3_i32 = arith.constant 3 : i32
    %47 = arith.addi %1, %c3_i32 : i32
    %48 = arith.index_cast %arg0 : i32 to index
    %49 = arith.index_cast %47 : i32 to index
    %50 = memref.load %arg1[%48, %49] : memref<1x8xi32, #tpu.memory_space<smem>>
    %51 = arith.index_cast %arg0 : i32 to index
    %52 = arith.index_cast %47 : i32 to index
    %53 = memref.load %arg2[%51, %52] : memref<1x8xi32, #tpu.memory_space<smem>>
    %54 = arith.index_cast %50 : i32 to index
    %c0_12 = arith.constant 0 : index
    %55 = vector.load %arg4[%54, %c0_12] : memref<10x32xf32, #tpu.memory_space<vmem>>, vector<1x32xf32>
    %56 = arith.index_cast %47 : i32 to index
    %c0_13 = arith.constant 0 : index
    %57 = vector.load %arg7[%56, %c0_13] : memref<8x32xf32, #tpu.memory_space<vmem>>, vector<1x32xf32>
    tpu.vector_store %arg7[%56, %c0_13], %55 {strides = array<i32>} : memref<8x32xf32, #tpu.memory_space<vmem>>, vector<1x32xf32>,
    %58 = arith.index_cast %53 : i32 to index
    %c0_14 = arith.constant 0 : index
    %59 = vector.load %arg5[%58, %c0_14] : memref<20x32xf32, #tpu.memory_space<vmem>>, vector<1x32xf32>
    %60 = arith.index_cast %47 : i32 to index
    %c0_15 = arith.constant 0 : index
    %61 = vector.load %arg8[%60, %c0_15] : memref<8x32xf32, #tpu.memory_space<vmem>>, vector<1x32xf32>
    tpu.vector_store %arg8[%60, %c0_15], %59 {strides = array<i32>} : memref<8x32xf32, #tpu.memory_space<vmem>>, vector<1x32xf32>,
    %c4_i32 = arith.constant 4 : i32
    %62 = arith.addi %1, %c4_i32 : i32
    %63 = arith.index_cast %arg0 : i32 to index
    %64 = arith.index_cast %62 : i32 to index
    %65 = memref.load %arg1[%63, %64] : memref<1x8xi32, #tpu.memory_space<smem>>
    %66 = arith.index_cast %arg0 : i32 to index
    %67 = arith.index_cast %62 : i32 to index
    %68 = memref.load %arg2[%66, %67] : memref<1x8xi32, #tpu.memory_space<smem>>
    %69 = arith.index_cast %65 : i32 to index
    %c0_16 = arith.constant 0 : index
    %70 = vector.load %arg4[%69, %c0_16] : memref<10x32xf32, #tpu.memory_space<vmem>>, vector<1x32xf32>
    %71 = arith.index_cast %62 : i32 to index
    %c0_17 = arith.constant 0 : index
    %72 = vector.load %arg7[%71, %c0_17] : memref<8x32xf32, #tpu.memory_space<vmem>>, vector<1x32xf32>
    tpu.vector_store %arg7[%71, %c0_17], %70 {strides = array<i32>} : memref<8x32xf32, #tpu.memory_space<vmem>>, vector<1x32xf32>,
    %73 = arith.index_cast %68 : i32 to index
    %c0_18 = arith.constant 0 : index
    %74 = vector.load %arg5[%73, %c0_18] : memref<20x32xf32, #tpu.memory_space<vmem>>, vector<1x32xf32>
    %75 = arith.index_cast %62 : i32 to index
    %c0_19 = arith.constant 0 : index
    %76 = vector.load %arg8[%75, %c0_19] : memref<8x32xf32, #tpu.memory_space<vmem>>, vector<1x32xf32>
    tpu.vector_store %arg8[%75, %c0_19], %74 {strides = array<i32>} : memref<8x32xf32, #tpu.memory_space<vmem>>, vector<1x32xf32>,
    %c5_i32 = arith.constant 5 : i32
    %77 = arith.addi %1, %c5_i32 : i32
    %78 = arith.index_cast %arg0 : i32 to index
    %79 = arith.index_cast %77 : i32 to index
    %80 = memref.load %arg1[%78, %79] : memref<1x8xi32, #tpu.memory_space<smem>>
    %81 = arith.index_cast %arg0 : i32 to index
    %82 = arith.index_cast %77 : i32 to index
    %83 = memref.load %arg2[%81, %82] : memref<1x8xi32, #tpu.memory_space<smem>>
    %84 = arith.index_cast %80 : i32 to index
    %c0_20 = arith.constant 0 : index
    %85 = vector.load %arg4[%84, %c0_20] : memref<10x32xf32, #tpu.memory_space<vmem>>, vector<1x32xf32>
    %86 = arith.index_cast %77 : i32 to index
    %c0_21 = arith.constant 0 : index
    %87 = vector.load %arg7[%86, %c0_21] : memref<8x32xf32, #tpu.memory_space<vmem>>, vector<1x32xf32>
    tpu.vector_store %arg7[%86, %c0_21], %85 {strides = array<i32>} : memref<8x32xf32, #tpu.memory_space<vmem>>, vector<1x32xf32>,
    %88 = arith.index_cast %83 : i32 to index
    %c0_22 = arith.constant 0 : index
    %89 = vector.load %arg5[%88, %c0_22] : memref<20x32xf32, #tpu.memory_space<vmem>>, vector<1x32xf32>
    %90 = arith.index_cast %77 : i32 to index
    %c0_23 = arith.constant 0 : index
    %91 = vector.load %arg8[%90, %c0_23] : memref<8x32xf32, #tpu.memory_space<vmem>>, vector<1x32xf32>
    tpu.vector_store %arg8[%90, %c0_23], %89 {strides = array<i32>} : memref<8x32xf32, #tpu.memory_space<vmem>>, vector<1x32xf32>,
    %c6_i32 = arith.constant 6 : i32
    %92 = arith.addi %1, %c6_i32 : i32
    %93 = arith.index_cast %arg0 : i32 to index
    %94 = arith.index_cast %92 : i32 to index
    %95 = memref.load %arg1[%93, %94] : memref<1x8xi32, #tpu.memory_space<smem>>
    %96 = arith.index_cast %arg0 : i32 to index
    %97 = arith.index_cast %92 : i32 to index
    %98 = memref.load %arg2[%96, %97] : memref<1x8xi32, #tpu.memory_space<smem>>
    %99 = arith.index_cast %95 : i32 to index
    %c0_24 = arith.constant 0 : index
    %100 = vector.load %arg4[%99, %c0_24] : memref<10x32xf32, #tpu.memory_space<vmem>>, vector<1x32xf32>
    %101 = arith.index_cast %92 : i32 to index
    %c0_25 = arith.constant 0 : index
    %102 = vector.load %arg7[%101, %c0_25] : memref<8x32xf32, #tpu.memory_space<vmem>>, vector<1x32xf32>
    tpu.vector_store %arg7[%101, %c0_25], %100 {strides = array<i32>} : memref<8x32xf32, #tpu.memory_space<vmem>>, vector<1x32xf32>,
    %103 = arith.index_cast %98 : i32 to index
    %c0_26 = arith.constant 0 : index
    %104 = vector.load %arg5[%103, %c0_26] : memref<20x32xf32, #tpu.memory_space<vmem>>, vector<1x32xf32>
    %105 = arith.index_cast %92 : i32 to index
    %c0_27 = arith.constant 0 : index
    %106 = vector.load %arg8[%105, %c0_27] : memref<8x32xf32, #tpu.memory_space<vmem>>, vector<1x32xf32>
    tpu.vector_store %arg8[%105, %c0_27], %104 {strides = array<i32>} : memref<8x32xf32, #tpu.memory_space<vmem>>, vector<1x32xf32>,
    %c7_i32 = arith.constant 7 : i32
    %107 = arith.addi %1, %c7_i32 : i32
    %108 = arith.index_cast %arg0 : i32 to index
    %109 = arith.index_cast %107 : i32 to index
    %110 = memref.load %arg1[%108, %109] : memref<1x8xi32, #tpu.memory_space<smem>>
    %111 = arith.index_cast %arg0 : i32 to index
    %112 = arith.index_cast %107 : i32 to index
    %113 = memref.load %arg2[%111, %112] : memref<1x8xi32, #tpu.memory_space<smem>>
    %114 = arith.index_cast %110 : i32 to index
    %c0_28 = arith.constant 0 : index
    %115 = vector.load %arg4[%114, %c0_28] : memref<10x32xf32, #tpu.memory_space<vmem>>, vector<1x32xf32>
    %116 = arith.index_cast %107 : i32 to index
    %c0_29 = arith.constant 0 : index
    %117 = vector.load %arg7[%116, %c0_29] : memref<8x32xf32, #tpu.memory_space<vmem>>, vector<1x32xf32>
    tpu.vector_store %arg7[%116, %c0_29], %115 {strides = array<i32>} : memref<8x32xf32, #tpu.memory_space<vmem>>, vector<1x32xf32>,
    %118 = arith.index_cast %113 : i32 to index
    %c0_30 = arith.constant 0 : index
    %119 = vector.load %arg5[%118, %c0_30] : memref<20x32xf32, #tpu.memory_space<vmem>>, vector<1x32xf32>
    %120 = arith.index_cast %107 : i32 to index
    %c0_31 = arith.constant 0 : index
    %121 = vector.load %arg8[%120, %c0_31] : memref<8x32xf32, #tpu.memory_space<vmem>>, vector<1x32xf32>
    tpu.vector_store %arg8[%120, %c0_31], %119 {strides = array<i32>} : memref<8x32xf32, #tpu.memory_space<vmem>>, vector<1x32xf32>,
    %c1_i32_32 = arith.constant 1 : i32
    %c0_33 = arith.constant 0 : index
    %c0_34 = arith.constant 0 : index
    %122 = vector.load %arg7[%c0_33, %c0_34] : memref<8x32xf32, #tpu.memory_space<vmem>>, vector<8x32xf32>
    %c0_35 = arith.constant 0 : index
    %c0_36 = arith.constant 0 : index
    %123 = vector.load %arg8[%c0_35, %c0_36] : memref<8x32xf32, #tpu.memory_space<vmem>>, vector<8x32xf32>
    %124 = arith.mulf %122, %123 : vector<8x32xf32>
    %c0_37 = arith.constant 0 : index
    %c0_38 = arith.constant 0 : index
    %125 = vector.load %arg3[%c0_37, %c0_38] : memref<1x32xf32, #tpu.memory_space<vmem>>, vector<1x32xf32>
    %126 = vector.shape_cast %125 : vector<1x32xf32> to vector<1x32xf32>
    %127 = vector.broadcast %126 : vector<1x32xf32> to vector<8x32xf32>
    %cst = arith.constant dense<0.000000e+00> : vector<8x8xf32>
    %128 = tpu.matmul %127, %124, %cst {dimension_numbers = #tpu.dot_dimension_numbers<[1], [1], [0], [0], [0, 0, 1, 0], [], []>} : vector<8x32xf32>, vector<8x32xf32>, vector<8x8xf32> -> vector<8x8xf32>
    %129 = vector.extract_strided_slice %128 {offsets = [0, 0], sizes = [1, 8], strides = [1, 1]} : vector<8x8xf32> to vector<1x8xf32>
    %130 = vector.shape_cast %129 : vector<1x8xf32> to vector<1x1x8xf32>
    %c0_39 = arith.constant 0 : index
    %c0_40 = arith.constant 0 : index
    %c0_41 = arith.constant 0 : index
    %131 = vector.load %arg6[%c0_39, %c0_40, %c0_41] : memref<1x1x8xf32, #tpu.memory_space<vmem>>, vector<1x1x8xf32>
    tpu.vector_store %arg6[%c0_39, %c0_40, %c0_41], %130 {strides = array<i32>} : memref<1x1x8xf32, #tpu.memory_space<vmem>>, vector<1x1x8xf32>,
    return
  }
  func.func @transform_0(%arg0: i32, %arg1: memref<1x8xi32, #tpu.memory_space<smem>>, %arg2: memref<1x8xi32, #tpu.memory_space<smem>>) -> (i32, i32) {
    %c0_i32 = arith.constant 0 : i32
    %c0_i32_0 = arith.constant 0 : i32
    %c0_i32_1 = arith.constant 0 : i32
    return %c0_i32, %c0_i32_0 : i32, i32
  }
  func.func @transform_1(%arg0: i32, %arg1: memref<1x8xi32, #tpu.memory_space<smem>>, %arg2: memref<1x8xi32, #tpu.memory_space<smem>>) -> (i32, i32) {
    %c0_i32 = arith.constant 0 : i32
    %c0_i32_0 = arith.constant 0 : i32
    %c0_i32_1 = arith.constant 0 : i32
    return %c0_i32, %c0_i32_0 : i32, i32
  }
  func.func @transform_2(%arg0: i32, %arg1: memref<1x8xi32, #tpu.memory_space<smem>>, %arg2: memref<1x8xi32, #tpu.memory_space<smem>>) -> (i32, i32) {
    %c0_i32 = arith.constant 0 : i32
    %c0_i32_0 = arith.constant 0 : i32
    %c0_i32_1 = arith.constant 0 : i32
    return %c0_i32, %c0_i32_0 : i32, i32
  }
  func.func @transform_3(%arg0: i32, %arg1: memref<1x8xi32, #tpu.memory_space<smem>>, %arg2: memref<1x8xi32, #tpu.memory_space<smem>>) -> (i32, i32, i32) {
    %c0_i32 = arith.constant 0 : i32
    %c0_i32_0 = arith.constant 0 : i32
    %c0_i32_1 = arith.constant 0 : i32
    return %arg0, %c0_i32, %c0_i32_0 : i32, i32, i32
  }
}

</mosaic_0001>

<bundles_post_ra>
// kernel: tpu_custom_call.1
= control target key start
LH: loop header
LB: loop body
LE: loop exit
PB: predicated region body
PF: predicated region fallthrough
CT: control target
= control target key end

     0   :  { %s410_s24 = smov [#allocation5]   ;;  %s411_s25 = smov [#allocation6]   ;;  %s481_s0 = inlined_call_operand.hbm [shape: s32[1,8], index: 0, kind: input, shape index: {}]   ;;  %s482_s2 = inlined_call_operand.vmem [shape: f32[1,32], index: 2, kind: input, shape index: {}]   ;;  %s483_s3 = inlined_call_operand.hbm [shape: f32[10,32], index: 3, kind: input, shape index: {}]   ;;  %s484_s4 = inlined_call_operand.hbm [shape: f32[20,32], index: 4, kind: input, shape index: {}]   ;;  %s485_s5 = inlined_call_operand.hbm [shape: f32[1,1,8], index: 5, kind: output, shape index: {}]   ;;  %s486_s1 = inlined_call_operand.hbm [shape: s32[1,8], index: 1, kind: input, shape index: {}]  }
   0x1   :  { %s11_s20 = sshll.u32 %s481_s0, 4  ;;  %s16_s23 = sshll.u32 %s486_s1, 4  ;;  %s12_s20 = int_to_ptr.hbm [resolvable:$true] %s11_s20  ;;  %s17_s23 = int_to_ptr.hbm [resolvable:$true] %s16_s23 }
   0x2   :  { %14 = dma.hbm_to_smem %s12_s20, 16, %s410_s24, [#allocation4] }
   0x3   :  { %19 = dma.hbm_to_smem %s17_s23, 16, %s411_s25, [#allocation4] }
   0x4   :  { %402 = dma.done.wait [#allocation4], 32 }
   0x5   :  { %403 = vsyncadd [#allocation4], 4294967264 }
   0x6   :  { %22 = sfence }
   0x7   :  { %23 = vsyncpa [#allocation8], 0 }
   0x8   :  { %24 = vsyncpa [#allocation11], 0 }
   0x9   :  { %25 = vsyncpa [#allocation9], 0  ;;  %s32_s0 = sshll.u32 %s483_s3, 4  ;;  %s412_s28 = smov [#allocation7]   ;;  %s33_s0 = int_to_ptr.hbm [resolvable:$true] %s32_s0 }
   0xa   :  { %s34_s29 = sshll.u32 %s412_s28, 4  ;;  %s45_s6 = sshll.u32 %s484_s4, 4  ;;  %s35_s29 = int_to_ptr.vmem [resolvable:$true] %s34_s29  ;;  %s46_s6 = int_to_ptr.hbm [resolvable:$true] %s45_s6 }
   0xb   :  { %s413_s7 = smov 128   ;;  %s414_s8 = smov 8  }
   0xc   :  { %40 = dma.hbm_to_vmem [thread:$0]  %s33_s0, 256, %s35_s29, [#allocation8], %s413_s7, %s413_s7, %s414_s8  }
   0xd   :  { %s415_s9 = smov [#allocation10]  }
   0xe   :  { %s47_s10 = sshll.u32 %s415_s9, 4  ;;  %s48_s10 = int_to_ptr.vmem [resolvable:$true] %s47_s10 }
   0xf   :  { %53 = dma.hbm_to_vmem [thread:$0]  %s46_s6, 384, %s48_s10, [#allocation11], %s413_s7, %s413_s7, %s414_s8  }
  0x10   :  { %404 = dma.done.wait [#allocation8], 256  }
  0x11   :  { %405 = vsyncadd [#allocation8], 4294967040 }
  0x12   :  { %406 = dma.done.wait [#allocation11], 384  }
  0x13   :  { %407 = vsyncadd [#allocation11], 4294966912  ;;  %s65_s3 = sld [smem:[#allocation5]]  ;;  %vm69_vm0 = vcmask 253952   ;;  %vm206_vm1 = vcmask 261120   ;;  %vm232_vm2 = vcmask 57344  }
  0x14   :  { %s66_s11 = sld [smem:[#allocation6]]  ;;  %v305_v19 = vld [vmem:[%s482_s2] ss:$0 sm:$0xff] }
  0x15   :  { %s282_s12 = sld [smem:[#allocation5 + $0x1]] }
  0x16   :  { %s283_s13 = sld [smem:[#allocation6 + $0x1]] }
  0x17   :  { %s284_s14 = sld [smem:[#allocation5 + $0x2]] }
  0x18   :  { %s285_s15 = sld [smem:[#allocation6 + $0x2]] }
  0x19   :  { %s286_s4 = sld [smem:[#allocation5 + $0x3]]  ;;  %s67_s16 = scalar_lea.vmem [#allocation7], %s65_s3 }
  0x1a   :  { %v68_v0 = vld [vmem:[%s67_s16] sm:$0x1]  ;;  %s287_s17 = sld [smem:[#allocation6 + $0x3]]  ;;  %s71_s18 = scalar_lea.vmem [#allocation10], %s66_s11 }
  0x1b   :  { %70 = vst.msk [vmem:[#allocation2] sm:$0x1] %vm69_vm0, %v68_v0  ;;  %v72_v1 = vld [vmem:[%s71_s18] sm:$0x1]  ;;  %s84_s19 = scalar_lea.vmem [#allocation7], %s282_s12  ;;  %s288_s25 = sld [smem:[#allocation5 + $0x4]] }
  0x1c   :  { %73 = vst.msk [vmem:[#allocation3] sm:$0x1] %vm69_vm0, %v72_v1  ;;  %v85_v2 = vld [vmem:[%s84_s19] sm:$0x1]  ;;  %s88_s20 = scalar_lea.vmem [#allocation10], %s283_s13  ;;  %s289_s26 = sld [smem:[#allocation6 + $0x4]] }
  0x1d   :  { %87 = vst.msk [vmem:[#allocation2 + $0x1] sm:$0x1] %vm69_vm0, %v85_v2  ;;  %v89_v3 = vld [vmem:[%s88_s20] sm:$0x1]  ;;  %s102_s21 = scalar_lea.vmem [#allocation7], %s284_s14  ;;  %s290_s27 = sld [smem:[#allocation5 + $0x5]] }
  0x1e   :  { %91 = vst.msk [vmem:[#allocation3 + $0x1] sm:$0x1] %vm69_vm0, %v89_v3  ;;  %v103_v4 = vld [vmem:[%s102_s21] sm:$0x1]  ;;  %s106_s22 = scalar_lea.vmem [#allocation10], %s285_s15  ;;  %s291_s0 = sld [smem:[#allocation6 + $0x5]] }
  0x1f   :  { %105 = vst.msk [vmem:[#allocation2 + $0x2] sm:$0x1] %vm69_vm0, %v103_v4  ;;  %v107_v5 = vld [vmem:[%s106_s22] sm:$0x1]  ;;  %s120_s23 = scalar_lea.vmem [#allocation7], %s286_s4  ;;  %s292_s28 = sld [smem:[#allocation5 + $0x6]] }
  0x20   :  { %109 = vst.msk [vmem:[#allocation3 + $0x2] sm:$0x1] %vm69_vm0, %v107_v5  ;;  %v121_v6 = vld [vmem:[%s120_s23] sm:$0x1]  ;;  %s124_s24 = scalar_lea.vmem [#allocation10], %s287_s17  ;;  %s293_s29 = sld [smem:[#allocation6 + $0x6]] }
  0x21   :  { %123 = vst.msk [vmem:[#allocation2 + $0x3] sm:$0x1] %vm69_vm0, %v121_v6  ;;  %v125_v7 = vld [vmem:[%s124_s24] sm:$0x1]  ;;  %s294_s1 = sld [smem:[#allocation5 + $0x7]]  ;;  %s138_s30 = scalar_lea.vmem [#allocation7], %s288_s25 }
  0x22   :  { %127 = vst.msk [vmem:[#allocation3 + $0x3] sm:$0x1] %vm69_vm0, %v125_v7  ;;  %v139_v8 = vld [vmem:[%s138_s30] sm:$0x1]  ;;  %s295_s6 = sld [smem:[#allocation6 + $0x7]]  ;;  %s142_s7 = scalar_lea.vmem [#allocation10], %s289_s26 }
  0x23   :  { %141 = vst.msk [vmem:[#allocation2 + $0x4] sm:$0x1] %vm69_vm0, %v139_v8  ;;  %v143_v9 = vld [vmem:[%s142_s7] sm:$0x1]  ;;  %s156_s8 = scalar_lea.vmem [#allocation7], %s290_s27  ;;  %s416_s15 = smov [#allocation12]  }
  0x24   :  { %145 = vst.msk [vmem:[#allocation3 + $0x4] sm:$0x1] %vm69_vm0, %v143_v9  ;;  %v157_v10 = vld [vmem:[%s156_s8] sm:$0x1]  ;;  %s160_s9 = scalar_lea.vmem [#allocation10], %s291_s0  ;;  %s239_s4 = sshll.u32 %s416_s15, 4  ;;  %s240_s4 = int_to_ptr.vmem [resolvable:$true] %s239_s4 }
  0x25   :  { %159 = vst.msk [vmem:[#allocation2 + $0x5] sm:$0x1] %vm69_vm0, %v157_v10  ;;  %v161_v11 = vld [vmem:[%s160_s9] sm:$0x1]  ;;  %s174_s10 = scalar_lea.vmem [#allocation7], %s292_s28  ;;  %s241_s18 = sshll.u32 %s485_s5, 4  ;;  %s242_s18 = int_to_ptr.hbm [resolvable:$true] %s241_s18 }
  0x26   :  { %163 = vst.msk [vmem:[#allocation3 + $0x5] sm:$0x1] %vm69_vm0, %v161_v11  ;;  %v175_v12 = vld [vmem:[%s174_s10] sm:$0x1]  ;;  %s178_s3 = scalar_lea.vmem [#allocation10], %s293_s29 }
  0x27   :  { %177 = vst.msk [vmem:[#allocation2 + $0x6] sm:$0x1] %vm69_vm0, %v175_v12  ;;  %v179_v13 = vld [vmem:[%s178_s3] sm:$0x1]  ;;  %s192_s11 = scalar_lea.vmem [#allocation7], %s294_s1 }
  0x28   :  { %181 = vst.msk [vmem:[#allocation3 + $0x6] sm:$0x1] %vm69_vm0, %v179_v13  ;;  %v193_v14 = vld [vmem:[%s192_s11] sm:$0x1]  ;;  %s196_s12 = scalar_lea.vmem [#allocation10], %s295_s6 }
  0x29   :  { %195 = vst.msk [vmem:[#allocation2 + $0x7] sm:$0x1] %vm69_vm0, %v193_v14  ;;  %v197_v15 = vld [vmem:[%s196_s12] sm:$0x1] }
  0x2a   :  { %199 = vst.msk [vmem:[#allocation3 + $0x7] sm:$0x1] %vm69_vm0, %v197_v15 }
  0x30   :  { %v200_v16 = vld [vmem:[#allocation2] sm:$0xff] }
  0x31   :  { %v201_v17 = vld [vmem:[#allocation3] sm:$0xff] }
  0x32   :  { %v202_v18 = vmul.f32 %v201_v17, %v200_v16 }
  0x34   :  { %296 = vmatpush.xpose.msk.msra.mxu0 %vm206_vm1, %v202_v18 }
  0x37   :  { %297 = vmatmul.msk.f32.vlgmr.msra.gmra.mxu0 %vm206_vm1, %v305_v19 }
  0xb4   :  { %v229_v20 = vpop.f32.mrf.mxu0 }
  0xb5   :  { %233 = vst.msk [vmem:[#allocation12] sm:$0x1] %vm232_vm2, %v229_v20 }
  0xb6   :  { %244 = dma.vmem_to_hbm [thread:$0]  %s240_s4, 16, %s242_s18, [#allocation9]  }
  0xb7   :  { %408 = dma.done.wait [#allocation9], 16  }
  0xb8   :  { %409 = vsyncadd [#allocation9], 4294967280 }
  0xb9   :  { %249 = vsyncpa [#allocation8], 1 }
  0xba   :  { %250 = vsyncpa [#allocation11], 1 }
  0xbb   :  { %251 = vsyncpa [#allocation9], 1 }

</bundles_post_ra>
